<compile_context>
chip_gen: v5e
topology: v5e:2x2
jax: 0.10.0
libtpu: 0.0.40
codegen_flags: <defaults>
</compile_context>

<pallas_src>
import functools
import math

import jax
import jax.numpy as jnp
from jax.experimental import pallas as pl
from jax.experimental.pallas import tpu as pltpu


# --------------------------------------------------------------------------
# Kernel
# --------------------------------------------------------------------------
def make_vae_kernel(num_enc: int, num_dec: int, z_dim: int):
    """Fused VAE forward kernel for a fixed number of hidden layers.

    Ref order: x, eps, [enc (w,b)]*num_enc, fused z-head (w,b),
               [dec (w,b)]*num_dec, x_mean head (w,b), out_slab
    """

    def kernel(*refs):
        x_ref, eps_ref = refs[0], refs[1]
        pos = 2

        # ---- encoder: Linear + ReLU stack ----
        h = x_ref[...]
        for _ in range(num_enc):
            w, b = refs[pos][...], refs[pos + 1][...]
            pos += 2
            h = jnp.maximum(
                jnp.dot(h, w, preferred_element_type=jnp.float32) + b, 0.0
            )

        # ---- fused z heads: one matmul -> [z_mean | z_logstd] ----
        zw, zb = refs[pos][...], refs[pos + 1][...]
        pos += 2
        zz = jnp.dot(h, zw, preferred_element_type=jnp.float32) + zb
        z_mean = zz[:, :z_dim]
        z_logstd = zz[:, z_dim:]

        # ---- reparameterization: z = mu + exp(logstd) * eps (exp -> EUP) ----
        z = z_mean + jnp.exp(z_logstd) * eps_ref[...]

        # ---- decoder: Linear + ReLU stack ----
        g = z
        for _ in range(num_dec):
            w, b = refs[pos][...], refs[pos + 1][...]
            pos += 2
            g = jnp.maximum(
                jnp.dot(g, w, preferred_element_type=jnp.float32) + b, 0.0
            )

        # ---- x_mean head ----
        xw, xb = refs[pos][...], refs[pos + 1][...]
        pos += 2
        x_hat = jnp.dot(g, xw, preferred_element_type=jnp.float32) + xb

        # ---- single lane-dense output slab: [x_hat | z | z_mean | z_logstd] ----
        out_ref = refs[pos]
        out_ref[...] = jnp.concatenate([x_hat, z, z_mean, z_logstd], axis=-1)

    n_inputs = 2 + 2 * num_enc + 2 + 2 * num_dec + 2
    return kernel, n_inputs


# --------------------------------------------------------------------------
# Parameter construction (PyTorch-style nn.Linear init, weights as (in, out))
# --------------------------------------------------------------------------
def init_linear(key, in_dim, out_dim, bias=True):
    kw, kb = jax.random.split(key)
    bound = 1.0 / math.sqrt(in_dim)
    w = jax.random.uniform(kw, (in_dim, out_dim), jnp.float32, -bound, bound)
    if bias:
        b = jax.random.uniform(kb, (1, out_dim), jnp.float32, -bound, bound)
        return w, b
    return (w,)


def build_params(key, x_dim, z_dim, hidden_dims):
    """Logical (unfused) parameter list, mirroring the PyTorch module."""
    params = []
    keys = jax.random.split(key, 2 * len(hidden_dims) + 4)
    k_idx = 0

    # encoder layers
    dims_in = [x_dim] + list(hidden_dims[:-1])
    for in_d, out_d in zip(dims_in, hidden_dims):
        params.extend(init_linear(keys[k_idx], in_d, out_d))
        k_idx += 1

    encode_dim = x_dim if len(hidden_dims) == 0 else hidden_dims[-1]
    decode_dim = z_dim if len(hidden_dims) == 0 else hidden_dims[0]

    # z heads
    params.extend(init_linear(keys[k_idx], encode_dim, z_dim)); k_idx += 1
    params.extend(init_linear(keys[k_idx], encode_dim, z_dim)); k_idx += 1

    # decoder layers
    rev = list(hidden_dims[::-1])
    dims_in = [z_dim] + rev[:-1]
    for in_d, out_d in zip(dims_in, rev):
        params.extend(init_linear(keys[k_idx], in_d, out_d))
        k_idx += 1

    # x heads
    params.extend(init_linear(keys[k_idx], decode_dim, x_dim)); k_idx += 1
    # fc_x_logstd: Linear(1, x_dim, bias=False); weight.T is (1, x_dim)
    (xl_w,) = init_linear(keys[k_idx], 1, x_dim, bias=False)
    params.append(xl_w)
    return params


def fuse_params(params, num_enc, num_dec):
    """Kernel-ready params: z heads fused, constant x_logstd weight split out."""
    pos = 0
    kp = []
    for _ in range(num_enc):
        kp.extend(params[pos:pos + 2]); pos += 2
    zm_w, zm_b, zl_w, zl_b = params[pos:pos + 4]; pos += 4
    kp.append(jnp.concatenate([zm_w, zl_w], axis=1))   # (enc_dim, 2*z_dim)
    kp.append(jnp.concatenate([zm_b, zl_b], axis=1))   # (1, 2*z_dim)
    for _ in range(num_dec):
        kp.extend(params[pos:pos + 2]); pos += 2
    xm_w, xm_b, xl_w = params[pos:pos + 3]
    kp.extend([xm_w, xm_b])
    return tuple(kp), xl_w


# --------------------------------------------------------------------------
# Wrapper
# --------------------------------------------------------------------------
def _pick_batch_tile(B, per_row_bytes, weight_bytes, vmem_budget=24 << 20):
    """Largest 8-aligned batch tile that fits the VMEM budget.

    Weights are VMEM-resident (single copy); activation tiles are
    double-buffered by the pipeline, so budget ~4x per-row bytes per row
    (2x double-buffer + 2x slack for intermediates).
    """
    b_rounded = max(8, -(-int(B) // 8) * 8)   # ceil to multiple of 8
    avail = max(vmem_budget - weight_bytes, 1 << 20)
    tb = avail // max(4 * per_row_bytes, 1)
    if tb >= b_rounded:
        return min(b_rounded, 4096)           # whole batch in one grid step
    tb = max(8, min(int(tb), 2048))
    return max(8, (tb // 8) * 8)


@functools.partial(jax.jit, static_argnames=("num_enc", "num_dec", "batch_tile"))
def vae_forward(x, eps, kernel_params, xl_w, *, num_enc, num_dec, batch_tile=None):
    B, x_dim = x.shape
    z_dim = eps.shape[1]
    out_feat = x_dim + 3 * z_dim

    kernel, n_in = make_vae_kernel(num_enc, num_dec, z_dim)
    assert n_in == 2 + len(kernel_params)

    weight_bytes = sum(int(p.size) * p.dtype.itemsize for p in kernel_params)
    per_row_bytes = 4 * (x_dim + z_dim + out_feat)
    tb = batch_tile if batch_tile is not None else _pick_batch_tile(
        B, per_row_bytes, weight_bytes)
    grid = (pl.cdiv(B, tb),)

    # activation streams: tiled along batch, double-buffered by the pipeline
    def batch_spec(feat):
        return pl.BlockSpec((tb, feat), lambda i: (i, 0))

    # weights/biases: constant block index -> DMA'd once, VMEM-resident
    def resident_spec(shape):
        return pl.BlockSpec(shape, lambda i: (0,) * len(shape))

    in_specs = [batch_spec(x_dim), batch_spec(z_dim)]
    in_specs += [resident_spec(p.shape) for p in kernel_params]
    out_specs = batch_spec(out_feat)

    # advisory cost estimate for the XLA scheduler
    flops = sum(2 * B * int(w.shape[0]) * int(w.shape[1])
                for w in kernel_params[0::2])
    bytes_accessed = (weight_bytes
                      + 4 * (int(x.size) + int(eps.size) + B * out_feat))
    cost = pl.CostEstimate(flops=flops,
                           transcendentals=B * z_dim,
                           bytes_accessed=bytes_accessed)

    out_slab = pl.pallas_call(
        kernel,
        grid=grid,
        out_shape=jax.ShapeDtypeStruct((B, out_feat), jnp.float32),
        in_specs=in_specs,
        out_specs=out_specs,
        compiler_params=pltpu.CompilerParams(
            dimension_semantics=("parallel",),
            vmem_limit_bytes=32 * 1024 * 1024,
        ),
        cost_estimate=cost,
    )(x, eps, *kernel_params)

    x_hat = out_slab[:, :x_dim]
    z = out_slab[:, x_dim:x_dim + z_dim]
    z_mean = out_slab[:, x_dim + z_dim:x_dim + 2 * z_dim]
    z_logstd = out_slab[:, x_dim + 2 * z_dim:]

    # x_logstd is input-independent: fc_x_logstd(ones(1,1)) == weight.T, clamped.
    x_logstd = jnp.clip(xl_w, -2.0, 5.0)
    return x_hat, x_logstd, z, z_mean, z_logstd


# --------------------------------------------------------------------------
# Pure-JAX reference (uses the logical/unfused params)
# --------------------------------------------------------------------------
def vae_forward_ref(x, eps, params, num_enc, num_dec):
    pos = 0
    h = x
    for _ in range(num_enc):
        w, b = params[pos], params[pos + 1]; pos += 2
        h = jnp.maximum(h @ w + b, 0.0)
    zm_w, zm_b, zl_w, zl_b = params[pos:pos + 4]; pos += 4
    z_mean = h @ zm_w + zm_b
    z_logstd = h @ zl_w + zl_b
    z = z_mean + jnp.exp(z_logstd) * eps
    g = z
    for _ in range(num_dec):
        w, b = params[pos], params[pos + 1]; pos += 2
        g = jnp.maximum(g @ w + b, 0.0)
    xm_w, xm_b, xl_w = params[pos:pos + 3]
    x_hat = g @ xm_w + xm_b
    x_logstd = jnp.clip(xl_w, -2.0, 5.0)
    return x_hat, x_logstd, z, z_mean, z_logstd


# --------------------------------------------------------------------------
if __name__ == "__main__":
    # Small shapes consistent with VAE_base(x_dim, z_dim, hidden_dims)
    x_dim, z_dim = 16, 8
    hidden_dims = [32, 24]
    batch = 128            # multiple of the sublane width (8)
    batch_tile = 64        # -> grid=(2,) to exercise the batch pipeline
    num_enc = num_dec = len(hidden_dims)

    key = jax.random.PRNGKey(0)
    k_params, k_x, k_eps = jax.random.split(key, 3)

    params = build_params(k_params, x_dim, z_dim, hidden_dims)
    kernel_params, xl_w = fuse_params(params, num_enc, num_dec)

    x = jax.random.normal(k_x, (batch, x_dim), jnp.float32)
    # epsilon for reparameterization (torch.randn_like equivalent)
    eps = jax.random.normal(k_eps, (batch, z_dim), jnp.float32)

    outs = vae_forward(x, eps, kernel_params, xl_w,
                       num_enc=num_enc, num_dec=num_dec, batch_tile=batch_tile)
    outs = jax.block_until_ready(outs)

    # Also exercise the auto batch-tile path (single grid step for this size).
    outs_auto = vae_forward(x, eps, kernel_params, xl_w,
                            num_enc=num_enc, num_dec=num_dec)
    outs_auto = jax.block_until_ready(outs_auto)

    refs = vae_forward_ref(x, eps, params, num_enc, num_dec)
    for o, a, r in zip(outs, outs_auto, refs):
        assert o.shape == r.shape, (o.shape, r.shape)
        assert jnp.allclose(o, r, atol=1e-4, rtol=1e-4)
        assert jnp.allclose(a, r, atol=1e-4, rtol=1e-4)

    print("KERNEL_OK")
</pallas_src>

<mosaic_0001>
module attributes {stable_mosaic.version = 11 : i64} {
  func.func @kernel(%arg0: i32, %arg1: memref<64x16xf32, #tpu.memory_space<vmem>>, %arg2: memref<64x8xf32, #tpu.memory_space<vmem>>, %arg3: memref<16x32xf32, #tpu.memory_space<vmem>>, %arg4: memref<1x32xf32, #tpu.memory_space<vmem>>, %arg5: memref<32x24xf32, #tpu.memory_space<vmem>>, %arg6: memref<1x24xf32, #tpu.memory_space<vmem>>, %arg7: memref<24x16xf32, #tpu.memory_space<vmem>>, %arg8: memref<1x16xf32, #tpu.memory_space<vmem>>, %arg9: memref<8x24xf32, #tpu.memory_space<vmem>>, %arg10: memref<1x24xf32, #tpu.memory_space<vmem>>, %arg11: memref<24x32xf32, #tpu.memory_space<vmem>>, %arg12: memref<1x32xf32, #tpu.memory_space<vmem>>, %arg13: memref<32x16xf32, #tpu.memory_space<vmem>>, %arg14: memref<1x16xf32, #tpu.memory_space<vmem>>, %arg15: memref<64x40xf32, #tpu.memory_space<vmem>>) attributes {dimension_semantics = [#tpu.dimension_semantics<parallel>], iteration_bounds = array<i64: 2>, scalar_prefetch = 0 : i64, scratch_operands = 0 : i64, tpu.core_type = #tpu.core_type<tc>, window_params = [{transform_indices = @transform_0, window_bounds = array<i64: 64, 16>}, {transform_indices = @transform_1, window_bounds = array<i64: 64, 8>}, {pipeline_mode = #tpu.pipeline_mode<synchronous>, transform_indices = @transform_2, window_bounds = array<i64: 16, 32>}, {pipeline_mode = #tpu.pipeline_mode<synchronous>, transform_indices = @transform_3, window_bounds = array<i64: 1, 32>}, {pipeline_mode = #tpu.pipeline_mode<synchronous>, transform_indices = @transform_4, window_bounds = array<i64: 32, 24>}, {pipeline_mode = #tpu.pipeline_mode<synchronous>, transform_indices = @transform_5, window_bounds = array<i64: 1, 24>}, {pipeline_mode = #tpu.pipeline_mode<synchronous>, transform_indices = @transform_6, window_bounds = array<i64: 24, 16>}, {pipeline_mode = #tpu.pipeline_mode<synchronous>, transform_indices = @transform_7, window_bounds = array<i64: 1, 16>}, {pipeline_mode = #tpu.pipeline_mode<synchronous>, transform_indices = @transform_8, window_bounds = array<i64: 8, 24>}, {pipeline_mode = #tpu.pipeline_mode<synchronous>, transform_indices = @transform_9, window_bounds = array<i64: 1, 24>}, {pipeline_mode = #tpu.pipeline_mode<synchronous>, transform_indices = @transform_10, window_bounds = array<i64: 24, 32>}, {pipeline_mode = #tpu.pipeline_mode<synchronous>, transform_indices = @transform_11, window_bounds = array<i64: 1, 32>}, {pipeline_mode = #tpu.pipeline_mode<synchronous>, transform_indices = @transform_12, window_bounds = array<i64: 32, 16>}, {pipeline_mode = #tpu.pipeline_mode<synchronous>, transform_indices = @transform_13, window_bounds = array<i64: 1, 16>}, {transform_indices = @transform_14, window_bounds = array<i64: 64, 40>}]} {
    %c0 = arith.constant 0 : index
    %c0_0 = arith.constant 0 : index
    %0 = vector.load %arg1[%c0, %c0_0] : memref<64x16xf32, #tpu.memory_space<vmem>>, vector<64x16xf32>
    %c0_1 = arith.constant 0 : index
    %c0_2 = arith.constant 0 : index
    %1 = vector.load %arg3[%c0_1, %c0_2] : memref<16x32xf32, #tpu.memory_space<vmem>>, vector<16x32xf32>
    %c0_3 = arith.constant 0 : index
    %c0_4 = arith.constant 0 : index
    %2 = vector.load %arg4[%c0_3, %c0_4] : memref<1x32xf32, #tpu.memory_space<vmem>>, vector<1x32xf32>
    %cst = arith.constant dense<0.000000e+00> : vector<64x32xf32>
    %3 = tpu.matmul %0, %1, %cst {dimension_numbers = #tpu.dot_dimension_numbers<[1], [0], [0], [1], [0, 0, 1, 1], [], []>} : vector<64x16xf32>, vector<16x32xf32>, vector<64x32xf32> -> vector<64x32xf32>
    %4 = vector.broadcast %2 : vector<1x32xf32> to vector<64x32xf32>
    %5 = arith.addf %3, %4 : vector<64x32xf32>
    %cst_5 = arith.constant 0.000000e+00 : f32
    %6 = vector.broadcast %cst_5 : f32 to vector<64x32xf32>
    %7 = arith.maximumf %5, %6 : vector<64x32xf32>
    %c0_6 = arith.constant 0 : index
    %c0_7 = arith.constant 0 : index
    %8 = vector.load %arg5[%c0_6, %c0_7] : memref<32x24xf32, #tpu.memory_space<vmem>>, vector<32x24xf32>
    %c0_8 = arith.constant 0 : index
    %c0_9 = arith.constant 0 : index
    %9 = vector.load %arg6[%c0_8, %c0_9] : memref<1x24xf32, #tpu.memory_space<vmem>>, vector<1x24xf32>
    %cst_10 = arith.constant dense<0.000000e+00> : vector<64x24xf32>
    %10 = tpu.matmul %7, %8, %cst_10 {dimension_numbers = #tpu.dot_dimension_numbers<[1], [0], [0], [1], [0, 0, 1, 1], [], []>} : vector<64x32xf32>, vector<32x24xf32>, vector<64x24xf32> -> vector<64x24xf32>
    %11 = vector.broadcast %9 : vector<1x24xf32> to vector<64x24xf32>
    %12 = arith.addf %10, %11 : vector<64x24xf32>
    %cst_11 = arith.constant 0.000000e+00 : f32
    %13 = vector.broadcast %cst_11 : f32 to vector<64x24xf32>
    %14 = arith.maximumf %12, %13 : vector<64x24xf32>
    %c0_12 = arith.constant 0 : index
    %c0_13 = arith.constant 0 : index
    %15 = vector.load %arg7[%c0_12, %c0_13] : memref<24x16xf32, #tpu.memory_space<vmem>>, vector<24x16xf32>
    %c0_14 = arith.constant 0 : index
    %c0_15 = arith.constant 0 : index
    %16 = vector.load %arg8[%c0_14, %c0_15] : memref<1x16xf32, #tpu.memory_space<vmem>>, vector<1x16xf32>
    %cst_16 = arith.constant dense<0.000000e+00> : vector<64x16xf32>
    %17 = tpu.matmul %14, %15, %cst_16 {dimension_numbers = #tpu.dot_dimension_numbers<[1], [0], [0], [1], [0, 0, 1, 1], [], []>} : vector<64x24xf32>, vector<24x16xf32>, vector<64x16xf32> -> vector<64x16xf32>
    %18 = vector.broadcast %16 : vector<1x16xf32> to vector<64x16xf32>
    %19 = arith.addf %17, %18 : vector<64x16xf32>
    %20 = vector.extract_strided_slice %19 {offsets = [0, 0], sizes = [64, 8], strides = [1, 1]} : vector<64x16xf32> to vector<64x8xf32>
    %21 = vector.extract_strided_slice %19 {offsets = [0, 8], sizes = [64, 8], strides = [1, 1]} : vector<64x16xf32> to vector<64x8xf32>
    %22 = math.exp %21 : vector<64x8xf32>
    %c0_17 = arith.constant 0 : index
    %c0_18 = arith.constant 0 : index
    %23 = vector.load %arg2[%c0_17, %c0_18] : memref<64x8xf32, #tpu.memory_space<vmem>>, vector<64x8xf32>
    %24 = arith.mulf %22, %23 : vector<64x8xf32>
    %25 = arith.addf %20, %24 : vector<64x8xf32>
    %c0_19 = arith.constant 0 : index
    %c0_20 = arith.constant 0 : index
    %26 = vector.load %arg9[%c0_19, %c0_20] : memref<8x24xf32, #tpu.memory_space<vmem>>, vector<8x24xf32>
    %c0_21 = arith.constant 0 : index
    %c0_22 = arith.constant 0 : index
    %27 = vector.load %arg10[%c0_21, %c0_22] : memref<1x24xf32, #tpu.memory_space<vmem>>, vector<1x24xf32>
    %cst_23 = arith.constant dense<0.000000e+00> : vector<64x24xf32>
    %28 = tpu.matmul %25, %26, %cst_23 {dimension_numbers = #tpu.dot_dimension_numbers<[1], [0], [0], [1], [0, 0, 1, 1], [], []>} : vector<64x8xf32>, vector<8x24xf32>, vector<64x24xf32> -> vector<64x24xf32>
    %29 = vector.broadcast %27 : vector<1x24xf32> to vector<64x24xf32>
    %30 = arith.addf %28, %29 : vector<64x24xf32>
    %cst_24 = arith.constant 0.000000e+00 : f32
    %31 = vector.broadcast %cst_24 : f32 to vector<64x24xf32>
    %32 = arith.maximumf %30, %31 : vector<64x24xf32>
    %c0_25 = arith.constant 0 : index
    %c0_26 = arith.constant 0 : index
    %33 = vector.load %arg11[%c0_25, %c0_26] : memref<24x32xf32, #tpu.memory_space<vmem>>, vector<24x32xf32>
    %c0_27 = arith.constant 0 : index
    %c0_28 = arith.constant 0 : index
    %34 = vector.load %arg12[%c0_27, %c0_28] : memref<1x32xf32, #tpu.memory_space<vmem>>, vector<1x32xf32>
    %cst_29 = arith.constant dense<0.000000e+00> : vector<64x32xf32>
    %35 = tpu.matmul %32, %33, %cst_29 {dimension_numbers = #tpu.dot_dimension_numbers<[1], [0], [0], [1], [0, 0, 1, 1], [], []>} : vector<64x24xf32>, vector<24x32xf32>, vector<64x32xf32> -> vector<64x32xf32>
    %36 = vector.broadcast %34 : vector<1x32xf32> to vector<64x32xf32>
    %37 = arith.addf %35, %36 : vector<64x32xf32>
    %cst_30 = arith.constant 0.000000e+00 : f32
    %38 = vector.broadcast %cst_30 : f32 to vector<64x32xf32>
    %39 = arith.maximumf %37, %38 : vector<64x32xf32>
    %c0_31 = arith.constant 0 : index
    %c0_32 = arith.constant 0 : index
    %40 = vector.load %arg13[%c0_31, %c0_32] : memref<32x16xf32, #tpu.memory_space<vmem>>, vector<32x16xf32>
    %c0_33 = arith.constant 0 : index
    %c0_34 = arith.constant 0 : index
    %41 = vector.load %arg14[%c0_33, %c0_34] : memref<1x16xf32, #tpu.memory_space<vmem>>, vector<1x16xf32>
    %cst_35 = arith.constant dense<0.000000e+00> : vector<64x16xf32>
    %42 = tpu.matmul %39, %40, %cst_35 {dimension_numbers = #tpu.dot_dimension_numbers<[1], [0], [0], [1], [0, 0, 1, 1], [], []>} : vector<64x32xf32>, vector<32x16xf32>, vector<64x16xf32> -> vector<64x16xf32>
    %43 = vector.broadcast %41 : vector<1x16xf32> to vector<64x16xf32>
    %44 = arith.addf %42, %43 : vector<64x16xf32>
    %45 = tpu.concatenate %44, %25, %20, %21 in 1 : vector<64x16xf32>, vector<64x8xf32>, vector<64x8xf32>, vector<64x8xf32> -> vector<64x40xf32>
    %c0_36 = arith.constant 0 : index
    %c0_37 = arith.constant 0 : index
    %46 = vector.load %arg15[%c0_36, %c0_37] : memref<64x40xf32, #tpu.memory_space<vmem>>, vector<64x40xf32>
    tpu.vector_store %arg15[%c0_36, %c0_37], %45 {strides = array<i32>} : memref<64x40xf32, #tpu.memory_space<vmem>>, vector<64x40xf32>,
    return
  }
  func.func @transform_0(%arg0: i32) -> (i32, i32) {
    %c0_i32 = arith.constant 0 : i32
    %c0_i32_0 = arith.constant 0 : i32
    return %arg0, %c0_i32 : i32, i32
  }
  func.func @transform_1(%arg0: i32) -> (i32, i32) {
    %c0_i32 = arith.constant 0 : i32
    %c0_i32_0 = arith.constant 0 : i32
    return %arg0, %c0_i32 : i32, i32
  }
  func.func @transform_2(%arg0: i32) -> (i32, i32) {
    %c0_i32 = arith.constant 0 : i32
    %c0_i32_0 = arith.constant 0 : i32
    %c0_i32_1 = arith.constant 0 : i32
    return %c0_i32, %c0_i32_0 : i32, i32
  }
  func.func @transform_3(%arg0: i32) -> (i32, i32) {
    %c0_i32 = arith.constant 0 : i32
    %c0_i32_0 = arith.constant 0 : i32
    %c0_i32_1 = arith.constant 0 : i32
    return %c0_i32, %c0_i32_0 : i32, i32
  }
  func.func @transform_4(%arg0: i32) -> (i32, i32) {
    %c0_i32 = arith.constant 0 : i32
    %c0_i32_0 = arith.constant 0 : i32
    %c0_i32_1 = arith.constant 0 : i32
    return %c0_i32, %c0_i32_0 : i32, i32
  }
  func.func @transform_5(%arg0: i32) -> (i32, i32) {
    %c0_i32 = arith.constant 0 : i32
    %c0_i32_0 = arith.constant 0 : i32
    %c0_i32_1 = arith.constant 0 : i32
    return %c0_i32, %c0_i32_0 : i32, i32
  }
  func.func @transform_6(%arg0: i32) -> (i32, i32) {
    %c0_i32 = arith.constant 0 : i32
    %c0_i32_0 = arith.constant 0 : i32
    %c0_i32_1 = arith.constant 0 : i32
    return %c0_i32, %c0_i32_0 : i32, i32
  }
  func.func @transform_7(%arg0: i32) -> (i32, i32) {
    %c0_i32 = arith.constant 0 : i32
    %c0_i32_0 = arith.constant 0 : i32
    %c0_i32_1 = arith.constant 0 : i32
    return %c0_i32, %c0_i32_0 : i32, i32
  }
  func.func @transform_8(%arg0: i32) -> (i32, i32) {
    %c0_i32 = arith.constant 0 : i32
    %c0_i32_0 = arith.constant 0 : i32
    %c0_i32_1 = arith.constant 0 : i32
    return %c0_i32, %c0_i32_0 : i32, i32
  }
  func.func @transform_9(%arg0: i32) -> (i32, i32) {
    %c0_i32 = arith.constant 0 : i32
    %c0_i32_0 = arith.constant 0 : i32
    %c0_i32_1 = arith.constant 0 : i32
    return %c0_i32, %c0_i32_0 : i32, i32
  }
  func.func @transform_10(%arg0: i32) -> (i32, i32) {
    %c0_i32 = arith.constant 0 : i32
    %c0_i32_0 = arith.constant 0 : i32
    %c0_i32_1 = arith.constant 0 : i32
    return %c0_i32, %c0_i32_0 : i32, i32
  }
  func.func @transform_11(%arg0: i32) -> (i32, i32) {
    %c0_i32 = arith.constant 0 : i32
    %c0_i32_0 = arith.constant 0 : i32
    %c0_i32_1 = arith.constant 0 : i32
    return %c0_i32, %c0_i32_0 : i32, i32
  }
  func.func @transform_12(%arg0: i32) -> (i32, i32) {
    %c0_i32 = arith.constant 0 : i32
    %c0_i32_0 = arith.constant 0 : i32
    %c0_i32_1 = arith.constant 0 : i32
    return %c0_i32, %c0_i32_0 : i32, i32
  }
  func.func @transform_13(%arg0: i32) -> (i32, i32) {
    %c0_i32 = arith.constant 0 : i32
    %c0_i32_0 = arith.constant 0 : i32
    %c0_i32_1 = arith.constant 0 : i32
    return %c0_i32, %c0_i32_0 : i32, i32
  }
  func.func @transform_14(%arg0: i32) -> (i32, i32) {
    %c0_i32 = arith.constant 0 : i32
    %c0_i32_0 = arith.constant 0 : i32
    return %arg0, %c0_i32 : i32, i32
  }
}

</mosaic_0001>

<bundles_post_ra>
// kernel: vae_forward.1
= control target key start
LH: loop header
LB: loop body
LE: loop exit
PB: predicated region body
PF: predicated region fallthrough
CT: control target
= control target key end

     0   :  { %s1414_s29 = smov 0   ;;  %s1685_s0 = inlined_call_operand.vmem [shape: f32[128,16], index: 0, kind: input, shape index: {}]   ;;  %s1686_s1 = inlined_call_operand.vmem [shape: f32[128,8], index: 1, kind: input, shape index: {}]   ;;  %s1687_s2 = inlined_call_operand.vmem [shape: f32[16,32], index: 2, kind: input, shape index: {}]   ;;  %s1688_s3 = inlined_call_operand.vmem [shape: f32[1,32], index: 3, kind: input, shape index: {}]   ;;  %s1689_s4 = inlined_call_operand.vmem [shape: f32[32,24], index: 4, kind: input, shape index: {}]   ;;  %s1690_s5 = inlined_call_operand.vmem [shape: f32[1,24], index: 5, kind: input, shape index: {}]   ;;  %s1691_s6 = inlined_call_operand.vmem [shape: f32[24,16], index: 6, kind: input, shape index: {}]   ;;  %s1692_s7 = inlined_call_operand.vmem [shape: f32[1,16], index: 7, kind: input, shape index: {}]   ;;  %s1693_s8 = inlined_call_operand.vmem [shape: f32[8,24], index: 8, kind: input, shape index: {}]   ;;  %s1694_s9 = inlined_call_operand.vmem [shape: f32[1,24], index: 9, kind: input, shape index: {}]   ;;  %s1695_s10 = inlined_call_operand.vmem [shape: f32[24,32], index: 10, kind: input, shape index: {}]   ;;  %s1696_s11 = inlined_call_operand.vmem [shape: f32[1,32], index: 11, kind: input, shape index: {}]   ;;  %s1697_s12 = inlined_call_operand.vmem [shape: f32[32,16], index: 12, kind: input, shape index: {}]   ;;  %s1698_s13 = inlined_call_operand.vmem [shape: f32[1,16], index: 13, kind: input, shape index: {}]   ;;  %s1699_s14 = inlined_call_operand.vmem [shape: f32[128,40], index: 14, kind: output, shape index: {}]  }
   0x1 LB: > { %s1229_s30 = sadd.s32 4294967295, %s1333_s29   ;;  %p1233_p0 = scmp.ge.s32.totalorder %s1333_s29, 1  ;;  %s1333_s29 = sphi %s1414_s29, %s24_s29  }
   0x2   : > { %p424_p1 = scmp.lt.s32.totalorder %s1333_s29, 3 }
   0x4   : > { %p425_p2 = pnand %p1233_p0, %p424_p1 }
   0x5   : > { %s1234_s19 = sshll.u32 (!%p425_p2), %s1229_s30, 3  ;;  %s1335_s16 = smov (!%p425_p2), 8  }
   0x6   : > { %428 = sbr.rel (%p425_p2) target bundleno = 1066 (0x42a), region = 76  ;;  %p476_p3 = scmp.lt.s32.totalorder (!%p425_p2), %s1234_s19, 15 }
   0x7   : > { %s1337_s20 = smov (!%p425_p2), 24   ;;  %s1338_s24 = smov (!%p425_p2), 16  }
   0xb   : > { %v502_v0 = vld [vmem:[%s1687_s2 + $0x8] sm:$0xff]  ;;  %v501_v1 = vld [vmem:[%s1687_s2] sm:$0xff]  ;;  %v584_v2 = vld [vmem:[%s1689_s4 + $0x18] sm:$0xff]  ;;  %s1701_s19 = smov (!%p476_p3, %s1234_s19), 15  ;;  %vm507_vm0 = vcmask 130048   ;;  %vm589_vm1 = vcmask 261120  }
   0xc   : > { %546 = vmatpush.msra.mxu0 %v502_v0  ;;  %1290 = vmatpush.msra.mxu2 %v502_v0  ;;  %s1431_s22 = sshll.u32 %s1701_s19, 3  ;;  %v583_v11 = vld [vmem:[%s1689_s4 + $0x10] sm:$0xff]  ;;  %v582_v12 = vld [vmem:[%s1689_s4 + $0x8] sm:$0xff]  ;;  %v581_v13 = vld [vmem:[%s1689_s4] sm:$0xff]  ;;  %vm670_vm2 = vcmask 195584   ;;  %s1336_s19 = smov 120  }
   0xd   : > { %626 = vmatpush.msra.mxu1 %v584_v2  ;;  %s479_s25 = scalar_lea.vmem %s1685_s0, %s1431_s22  ;;  %v1305_v14 = vld [vmem:[%s1688_s3] ss:$0 sm:$0xff]  ;;  %v665_v24 = vld [vmem:[%s1691_s6 + $0x10] sm:$0xff]  ;;  %v664_v25 = vld [vmem:[%s1691_s6 + $0x8] sm:$0xff]  ;;  %s1481_s15 = scalar_lea.vmem %s1686_s1, %s1431_s22  ;;  %vm845_vm3 = vcmask 64512   ;;  %vm1152_vm4 = vcmask 326656  }
   0xe   : > { %547 = vmatpush.msra.mxu0 %v501_v1  ;;  %1291 = vmatpush.msra.mxu2 %v501_v1  ;;  %v493_v3 = vld [vmem:[%s479_s25] sm:$0xff]  ;;  %v494_v5 = vld [vmem:[%s479_s25 + $0x8] sm:$0xff]  ;;  %v495_v7 = vld [vmem:[%s479_s25 + $0x10] sm:$0xff]  ;;  %s1632_s18 = scalar_lea.vmem %s1699_s14, %s1431_s22 }
   0xf   : > { %1240 = vmatmul.msk.f32.vlgmr.msra.gmra.mxu0 %vm507_vm0, %v493_v3  ;;  %v497_v4 = vld [vmem:[%s479_s25 + $0x20] sm:$0xff]  ;;  %v498_v6 = vld [vmem:[%s479_s25 + $0x28] sm:$0xff]  ;;  %v499_v8 = vld [vmem:[%s479_s25 + $0x30] sm:$0xff]  ;;  %627 = vmatpush.msra.mxu1 %v583_v11 }
  0x10   : > { %1244 = vmatmul.msk.f32.vlgmr.msra.gmra.mxu2 %vm507_vm0, %v497_v4  ;;  %v496_v9 = vld [vmem:[%s479_s25 + $0x18] sm:$0xff]  ;;  %v663_v27 = vld [vmem:[%s1691_s6] sm:$0xff]  ;;  %v753_v48 = vld [vmem:[%s1481_s15 + $0x8] sm:$0xff] }
  0x11   : > { %v500_v10 = vld [vmem:[%s479_s25 + $0x38] sm:$0xff]  ;;  %628 = vmatpush.msra.mxu1 %v582_v12  ;;  %708 = vmatpush.msrb.mxu2 %v665_v24  ;;  %v1306_v42 = vld [vmem:[%s1690_s5] ss:$0 sm:$0xff]  ;;  %v754_v52 = vld [vmem:[%s1481_s15 + $0x10] sm:$0xff] }
  0x12   : > { %v752_v44 = vld [vmem:[%s1481_s15] sm:$0xff]  ;;  %772 = vrot.lane.b32.xlu1 %v754_v52, %s1335_s16  ;;  %v755_v56 = vld [vmem:[%s1481_s15 + $0x18] sm:$0xff]  ;;  %v757_v60 = vld [vmem:[%s1481_s15 + $0x28] sm:$0xff] }
  0x13   : > { %629 = vmatpush.msra.mxu1 %v581_v13  ;;  %709 = vmatpush.msrb.mxu2 %v664_v25  ;;  %v756_v55 = vld [vmem:[%s1481_s15 + $0x20] sm:$0xff]  ;;  %v758_v61 = vld [vmem:[%s1481_s15 + $0x30] sm:$0xff]  ;;  %v759_v25 = vld [vmem:[%s1481_s15 + $0x38] sm:$0xff] }
  0x14   : > { %768 = vrot.lane.b32.xlu0 %v752_v44, %s1335_s16  ;;  %776 = vrot.lane.b32.xlu2 %v756_v55, %s1335_s16 }
  0x15   : > { %710 = vmatpush.msrb.mxu2 %v663_v27 }
  0x17   : > { %1241 = vmatmul.msk.f32.gmra.mxu0 %vm507_vm0, %v494_v5 }
  0x18   : > { %1245 = vmatmul.msk.f32.gmra.mxu2 %vm507_vm0, %v498_v6 }
  0x1a   : > { %774 = vrot.lane.b32.xlu1 %v755_v56, %s1335_s16 }
  0x1c   : > { %770 = vrot.lane.b32.xlu0 %v753_v48, %s1335_s16  ;;  %778 = vrot.lane.b32.xlu2 %v757_v60, %s1335_s16 }
  0x1f   : > { %1242 = vmatmul.msk.f32.gmra.mxu0 %vm507_vm0, %v495_v7 }
  0x20   : > { %1246 = vmatmul.msk.f32.gmra.mxu2 %vm507_vm0, %v499_v8 }
  0x22   : > { %780 = vrot.lane.b32.xlu1 %v758_v61, %s1335_s16 }
  0x27   : > { %1243 = vmatmul.msk.f32.gmra.mxu0 %vm507_vm0, %v496_v9 }
  0x28   : > { %1247 = vmatmul.msk.f32.gmra.mxu2 %vm507_vm0, %v500_v10  ;;  %v1508_v10 = vld [vmem:[%s1692_s7] ss:$0 sm:$0xff] }
  0x84   : > { %v773_v27 = vpop.permute.xlu1 %772 }
  0x8c   : > { %v549_v15 = vpop.f32.mrf.mxu0 }
  0x8d   : > { %v550_v16 = vadd.f32 %v1305_v14, %v549_v15 }
  0x8f   : > { %v573_v17 = vmax.f32 %v550_v16, 0.0 }
  0x91   : > { %1248 = vmatmul.msk.f32.vlgmr.msra.gmra.mxu1 %vm589_vm1, %v573_v17 }
  0x93   : > { %v561_v26 = vpop.f32.mrf.mxu2 }
  0x94   : > { %v552_v18 = vpop.f32.mrf.mxu0  ;;  %v562_v31 = vadd.f32 %v1305_v14, %v561_v26 }
  0x95   : > { %v553_v19 = vadd.f32 %v1305_v14, %v552_v18 }
  0x96   : > { %v577_v33 = vmax.f32 %v562_v31, 0.0 }
  0x97   : > { %v574_v20 = vmax.f32 %v553_v19, 0.0 }
  0x99   : > { %1249 = vmatmul.msk.f32.gmra.mxu1 %vm589_vm1, %v574_v20 }
  0x9b   : > { %v564_v32 = vpop.f32.mrf.mxu2 }
  0x9c   : > { %v555_v21 = vpop.f32.mrf.mxu0  ;;  %v565_v34 = vadd.f32 %v1305_v14, %v564_v32 }
  0x9d   : > { %v556_v22 = vadd.f32 %v1305_v14, %v555_v21 }
  0x9e   : > { %v578_v35 = vmax.f32 %v565_v34, 0.0 }
  0x9f   : > { %v575_v23 = vmax.f32 %v556_v22, 0.0 }
  0xa1   : > { %1250 = vmatmul.msk.f32.gmra.mxu1 %vm589_vm1, %v575_v23 }
  0xa3   : > { %v567_v36 = vpop.f32.mrf.mxu2 }
  0xa4   : > { %v558_v28 = vpop.f32.mrf.mxu0  ;;  %v568_v37 = vadd.f32 %v1305_v14, %v567_v36 }
  0xa5   : > { %v559_v29 = vadd.f32 %v1305_v14, %v558_v28 }
  0xa6   : > { %v579_v38 = vmax.f32 %v568_v37, 0.0 }
  0xa7   : > { %v576_v30 = vmax.f32 %v559_v29, 0.0 }
  0xa9   : > { %1251 = vmatmul.msk.f32.gmra.mxu1 %vm589_vm1, %v576_v30 }
  0xab   : > { %v570_v39 = vpop.f32.mrf.mxu2 }
  0xac   : > { %v571_v40 = vadd.f32 %v1305_v14, %v570_v39  ;;  %v769_v14 = vpop.permute.xlu0 %768  ;;  %v777_v39 = vpop.permute.xlu2 %776 }
  0xae   : > { %v580_v41 = vmax.f32 %v571_v40, 0.0 }
  0xb1   : > { %1252 = vmatmul.msk.f32.gmra.mxu1 %vm589_vm1, %v577_v33 }
  0xb4   : > { %v771_v22 = vpop.permute.xlu0 %770 }
  0xb9   : > { %1253 = vmatmul.msk.f32.gmra.mxu1 %vm589_vm1, %v578_v35  ;;  %v775_v35 = vpop.permute.xlu1 %774 }
  0xc1   : > { %1254 = vmatmul.msk.f32.gmra.mxu1 %vm589_vm1, %v579_v38 }
  0xc9   : > { %1255 = vmatmul.msk.f32.gmra.mxu1 %vm589_vm1, %v580_v41 }
 0x10e   : > { %v631_v43 = vpop.f32.mrf.mxu1 }
 0x10f   : > { %v632_v45 = vadd.f32 %v1306_v42, %v631_v43 }
 0x111   : > { %v655_v46 = vmax.f32 %v632_v45, 0.0 }
 0x113   : > { %1256 = vmatmul.msk.f32.vlgmr.msrb.gmra.mxu2 %vm670_vm2, %v655_v46 }
 0x116   : > { %v634_v47 = vpop.f32.mrf.mxu1 }
 0x117   : > { %v635_v49 = vadd.f32 %v1306_v42, %v634_v47  ;;  %v779_v47 = vpop.permute.xlu2 %778 }
 0x119   : > { %v656_v50 = vmax.f32 %v635_v49, 0.0 }
 0x11b   : > { %1257 = vmatmul.msk.f32.gmra.mxu2 %vm670_vm2, %v656_v50 }
 0x11e   : > { %v637_v51 = vpop.f32.mrf.mxu1 }
 0x11f   : > { %v638_v53 = vadd.f32 %v1306_v42, %v637_v51  ;;  %v781_v51 = vpop.permute.xlu1 %780 }
 0x121   : > { %v657_v54 = vmax.f32 %v638_v53, 0.0 }
 0x123   : > { %1258 = vmatmul.msk.f32.gmra.mxu2 %vm670_vm2, %v657_v54  ;;  %v840_v54 = vld [vmem:[%s1693_s8] sm:$0xff] }
 0x124   : > { %885 = vmatpush.msrb.mxu1 %v840_v54  ;;  %1292 = vmatpush.msra.mxu3 %v840_v54 }
 0x126   : > { %v640_v57 = vpop.f32.mrf.mxu1 }
 0x127   : > { %v641_v58 = vadd.f32 %v1306_v42, %v640_v57 }
 0x129   : > { %v658_v59 = vmax.f32 %v641_v58, 0.0 }
 0x12b   : > { %1259 = vmatmul.msk.f32.gmra.mxu2 %vm670_vm2, %v658_v59 }
 0x12e   : > { %v643_v62 = vpop.f32.mrf.mxu1 }
 0x12f   : > { %v644_v63 = vadd.f32 %v1306_v42, %v643_v62 }
 0x131   : > { %v659_v0 = vmax.f32 %v644_v63, 0.0 }
 0x133   : > { %1260 = vmatmul.msk.f32.gmra.mxu2 %vm670_vm2, %v659_v0 }
 0x136   : > { %v646_v1 = vpop.f32.mrf.mxu1 }
 0x137   : > { %v647_v2 = vadd.f32 %v1306_v42, %v646_v1 }
 0x139   : > { %v660_v3 = vmax.f32 %v647_v2, 0.0 }
 0x13b   : > { %1261 = vmatmul.msk.f32.gmra.mxu2 %vm670_vm2, %v660_v3 }
 0x13e   : > { %v649_v4 = vpop.f32.mrf.mxu1 }
 0x13f   : > { %v650_v5 = vadd.f32 %v1306_v42, %v649_v4 }
 0x141   : > { %v661_v6 = vmax.f32 %v650_v5, 0.0 }
 0x143   : > { %1262 = vmatmul.msk.f32.gmra.mxu2 %vm670_vm2, %v661_v6 }
 0x146   : > { %v652_v7 = vpop.f32.mrf.mxu1 }
 0x147   : > { %v653_v8 = vadd.f32 %v1306_v42, %v652_v7 }
 0x149   : > { %v662_v9 = vmax.f32 %v653_v8, 0.0 }
 0x14b   : > { %1263 = vmatmul.msk.f32.gmra.mxu2 %vm670_vm2, %v662_v9 }
 0x196   : > { %v712_v11 = vpop.f32.mrf.mxu2 }
 0x197   : > { %v1511_v12 = vadd.f32 %v1508_v10, %v712_v11  ;;  %v921_v11 = vld [vmem:[%s1695_s10 + $0x10] sm:$0xff] }
 0x198   : > { %963 = vmatpush.msrb.mxu3 %v921_v11 }
 0x199   : > { %v736_v13 = vmul.f32 1.442695, %v1511_v12 }
 0x19b   : > { %1311 = vpow2.f32 %v736_v13  ;;  %v919_v13 = vld [vmem:[%s1695_s10] sm:$0xff] }
 0x19e   : > { %v715_v15 = vpop.f32.mrf.mxu2 }
 0x19f   : > { %v716_v16 = vadd.f32 %v1508_v10, %v715_v15 }
 0x1a1   : > { %v1312_v17 = vpop.eup %1311  ;;  %v738_v18 = vmul.f32 1.442695, %v716_v16 }
 0x1a2   : > { %v792_v19 = vmul.f32 %v1312_v17, %v769_v14 }
 0x1a3   : > { %1313 = vpow2.f32 %v738_v18 }
 0x1a4   : > { %808 = vrot.lane.b32.xlu0 %v792_v19, %s1336_s19 }
 0x1a6   : > { %v718_v20 = vpop.f32.mrf.mxu2 }
 0x1a7   : > { %v1517_v21 = vadd.f32 %v1508_v10, %v718_v20 }
 0x1a9   : > { %v1314_v23 = vpop.eup %1313  ;;  %v740_v24 = vmul.f32 1.442695, %v1517_v21 }
 0x1aa   : > { %v793_v26 = vmul.f32 %v1314_v23, %v771_v22 }
 0x1ab   : > { %1315 = vpow2.f32 %v740_v24 }
 0x1ac   : > { %810 = vrot.lane.b32.xlu2 %v793_v26, %s1336_s19  ;;  %782 = vrot.lane.b32.xlu0 %v759_v25, %s1335_s16 }
 0x1ae   : > { %v721_v28 = vpop.f32.mrf.mxu2 }
 0x1af   : > { %v1524_v29 = vadd.f32 %v1508_v10, %v721_v28 }
 0x1b1   : > { %v1316_v30 = vpop.eup %1315  ;;  %v742_v31 = vmul.f32 1.442695, %v1524_v29 }
 0x1b2   : > { %v794_v32 = vmul.f32 %v1316_v30, %v773_v27 }
 0x1b3   : > { %1317 = vpow2.f32 %v742_v31 }
 0x1b4   : > { %812 = vrot.lane.b32.xlu1 %v794_v32, %s1336_s19 }
 0x1b6   : > { %v724_v33 = vpop.f32.mrf.mxu2 }
 0x1b7   : > { %v1529_v34 = vadd.f32 %v1508_v10, %v724_v33 }
 0x1b9   : > { %v1318_v36 = vpop.eup %1317  ;;  %v744_v37 = vmul.f32 1.442695, %v1529_v34 }
 0x1ba   : > { %v795_v38 = vmul.f32 %v1318_v36, %v775_v35 }
 0x1bb   : > { %1319 = vpow2.f32 %v744_v37 }
 0x1bc   : > { %814 = vrot.lane.b32.xlu2 %v795_v38, %s1336_s19  ;;  %v1002_v38 = vld [vmem:[%s1697_s12 + $0x18] sm:$0xff] }
 0x1bd   : > { %1043 = vmatpush.msrb.mxu0 %v1002_v38 }
 0x1be   : > { %v727_v40 = vpop.f32.mrf.mxu2 }
 0x1bf   : > { %v1534_v41 = vadd.f32 %v1508_v10, %v727_v40  ;;  %v1000_v40 = vld [vmem:[%s1697_s12 + $0x8] sm:$0xff] }
 0x1c1   : > { %v1320_v42 = vpop.eup %1319  ;;  %v746_v43 = vmul.f32 1.442695, %v1534_v41 }
 0x1c2   : > { %v796_v44 = vmul.f32 %v1320_v42, %v777_v39  ;;  %v1001_v39 = vld [vmem:[%s1697_s12 + $0x10] sm:$0xff] }
 0x1c3   : > { %1321 = vpow2.f32 %v746_v43  ;;  %1044 = vmatpush.msrb.mxu0 %v1001_v39 }
 0x1c4   : > { %816 = vrot.lane.b32.xlu0 %v796_v44, %s1336_s19 }
 0x1c5   : > { %1045 = vmatpush.msrb.mxu0 %v1000_v40 }
 0x1c6   : > { %v730_v45 = vpop.f32.mrf.mxu2 }
 0x1c7   : > { %v731_v46 = vadd.f32 %v1508_v10, %v730_v45  ;;  %v1309_v45 = vld [vmem:[%s1696_s11] ss:$0 sm:$0xff] }
 0x1c9   : > { %v1322_v48 = vpop.eup %1321  ;;  %v748_v49 = vmul.f32 1.442695, %v731_v46 }
 0x1ca   : > { %v797_v50 = vmul.f32 %v1322_v48, %v779_v47 }
 0x1cb   : > { %1323 = vpow2.f32 %v748_v49 }
 0x1cc   : > { %818 = vrot.lane.b32.xlu1 %v797_v50, %s1336_s19 }
 0x1ce   : > { %v733_v57 = vpop.f32.mrf.mxu2 }
 0x1cf   : > { %v734_v58 = vadd.f32 %v1508_v10, %v733_v57 }
 0x1d1   : > { %v1324_v52 = vpop.eup %1323  ;;  %v750_v59 = vmul.f32 1.442695, %v734_v58 }
 0x1d2   : > { %v798_v53 = vmul.f32 %v1324_v52, %v781_v51 }
 0x1d3   : > { %1325 = vpow2.f32 %v750_v59 }
 0x1d4   : > { %820 = vrot.lane.b32.xlu2 %v798_v53, %s1336_s19  ;;  %1106 = vrot.lane.b32.xlu1 %v716_v16, %s1337_s20 }
 0x1d9   : > { %v1326_v0 = vpop.eup %1325 }
 0x1dc   : > { %1108 = vrot.lane.b32.xlu2 %v1517_v21, %s1337_s20  ;;  %1112 = vrot.lane.b32.xlu1 %v1529_v34, %s1337_s20 }
 0x206   : > { %v811_v55 = vpop.permute.xlu2 %810 }
 0x207   : > { %v833_v56 = vadd.f32 %v811_v55, %v716_v16  ;;  %v1308_v16 = vld [vmem:[%s1694_s9] ss:$0 sm:$0xff] }
 0x209   : > { %1074 = vrot.lane.b32.xlu2 %v833_v56, %s1338_s24 }
 0x216   : > { %v815_v60 = vpop.permute.xlu2 %814  ;;  %v809_v61 = vpop.permute.xlu0 %808 }
 0x217   : > { %v835_v62 = vadd.f32 %v815_v60, %v1524_v29  ;;  %v832_v63 = vadd.f32 %v809_v61, %v1511_v12 }
 0x219   : > { %1267 = vmatmul.msk.f32.vlgmr.msra.gmra.mxu3 %vm845_vm3, %v835_v62  ;;  %1072 = vrot.lane.b32.xlu1 %v832_v63, %s1338_s24 }
 0x21a   : > { %1264 = vmatmul.msk.f32.vlgmr.msrb.gmra.mxu1 %vm845_vm3, %v832_v63 }
 0x21e   : > { %v783_v1 = vpop.permute.xlu0 %782 }
 0x21f   : > { %v799_v2 = vmul.f32 %v1326_v0, %v783_v1 }
 0x221   : > { %1078 = vrot.lane.b32.xlu1 %v835_v62, %s1338_s24  ;;  %822 = vrot.lane.b32.xlu0 %v799_v2, %s1336_s19 }
 0x222   : > { %1265 = vmatmul.msk.f32.gmra.mxu1 %vm845_vm3, %v833_v56 }
 0x226   : > { %v813_v3 = vpop.permute.xlu1 %812 }
 0x227   : > { %v834_v4 = vadd.f32 %v813_v3, %v1517_v21 }
 0x229   : > { %1104 = vrot.lane.b32.xlu0 %v1511_v12, %s1337_s20  ;;  %v920_v12 = vld [vmem:[%s1695_s10 + $0x8] sm:$0xff] }
 0x22a   : > { %1266 = vmatmul.msk.f32.gmra.mxu1 %vm845_vm3, %v834_v4  ;;  %964 = vmatpush.msrb.mxu3 %v920_v12 }
 0x22c   : > { %965 = vmatpush.msrb.mxu3 %v919_v13 }
 0x22e   : > { %v821_v5 = vpop.permute.xlu2 %820 }
 0x22f   : > { %v838_v6 = vadd.f32 %v821_v5, %v731_v46  ;;  %v1625_v5 = vld [vmem:[%s1698_s13] ss:$0 sm:$0xff] }
 0x231   : > { %1084 = vrot.lane.b32.xlu1 %v838_v6, %s1338_s24  ;;  %1110 = vrot.lane.b32.xlu0 %v1524_v29, %s1337_s20 }
 0x236   : > { %v817_v7 = vpop.permute.xlu0 %816  ;;  %v1109_v12 = vpop.permute.xlu2 %1108 }
 0x237   : > { %v836_v8 = vadd.f32 %v817_v7, %v1529_v34 }
 0x239   : > { %1118 = vrot.lane.b32.xlu1 %v734_v58, %s1337_s20  ;;  %1076 = vrot.lane.b32.xlu0 %v834_v4, %s1338_s24 }
 0x23a   : > { %1080 = vrot.lane.b32.xlu2 %v836_v8, %s1338_s24  ;;  %1268 = vmatmul.msk.f32.gmra.mxu3 %vm845_vm3, %v836_v8 }
 0x23e   : > { %v819_v9 = vpop.permute.xlu1 %818 }
 0x23f   : > { %v837_v10 = vadd.f32 %v819_v9, %v1534_v41 }
 0x241   : > { %1082 = vrot.lane.b32.xlu0 %v837_v10, %s1338_s24 }
 0x242   : > { %1269 = vmatmul.msk.f32.gmra.mxu3 %vm845_vm3, %v837_v10 }
 0x246   : > { %v1107_v3 = vpop.permute.xlu1 %1106 }
 0x249   : > { %1116 = vrot.lane.b32.xlu0 %v731_v46, %s1337_s20 }
 0x24a   : > { %1270 = vmatmul.msk.f32.gmra.mxu3 %vm845_vm3, %v838_v6 }
 0x24e   : > { %v1113_v4 = vpop.permute.xlu1 %1112 }
 0x28b   : > { %v1073_v13 = vpop.permute.xlu1 %1072 }
 0x293   : > { %v823_v14 = vpop.permute.xlu0 %822 }
 0x294   : > { %v839_v15 = vadd.f32 %v823_v14, %v734_v58 }
 0x296   : > { %1086 = vrot.lane.b32.xlu2 %v839_v15, %s1338_s24  ;;  %1271 = vmatmul.msk.f32.gmra.mxu3 %vm845_vm3, %v839_v15 }
 0x297   : > { %v887_v17 = vpop.f32.mrf.mxu1 }
 0x298   : > { %v888_v18 = vadd.f32 %v1308_v16, %v887_v17 }
 0x29a   : > { %v911_v19 = vmax.f32 %v888_v18, 0.0 }
 0x29b   : > { %v1105_v6 = vpop.permute.xlu0 %1104 }
 0x29c   : > { %v896_v26 = vpop.f32.mrf.mxu3 }
 0x29d   : > { %v897_v27 = vadd.f32 %v1308_v16, %v896_v26 }
 0x29e   : > { %1114 = vrot.lane.b32.xlu2 %v1534_v41, %s1337_s20  ;;  %1272 = vmatmul.msk.f32.vlgmr.msrb.gmra.mxu3 %vm670_vm2, %v911_v19  ;;  %v999_v41 = vld [vmem:[%s1697_s12] sm:$0xff] }
 0x29f   : > { %v890_v20 = vpop.f32.mrf.mxu1  ;;  %v914_v28 = vmax.f32 %v897_v27, 0.0  ;;  %1046 = vmatpush.msrb.mxu0 %v999_v41 }
 0x2a0   : > { %v891_v21 = vadd.f32 %v1308_v16, %v890_v20  ;;  %v1075_v20 = vpop.permute.xlu2 %1074 }
 0x2a2   : > { %v912_v22 = vmax.f32 %v891_v21, 0.0 }
 0x2a3   : > { %v1111_v17 = vpop.permute.xlu0 %1110 }
 0x2a6   : > { %1273 = vmatmul.msk.f32.gmra.mxu3 %vm670_vm2, %v912_v22 }
 0x2a7   : > { %v893_v23 = vpop.f32.mrf.mxu1 }
 0x2a8   : > { %v894_v24 = vadd.f32 %v1308_v16, %v893_v23 }
 0x2aa   : > { %v913_v25 = vmax.f32 %v894_v24, 0.0 }
 0x2ab   : > { %v1077_v26 = vpop.permute.xlu0 %1076 }
 0x2ae   : > { %1274 = vmatmul.msk.f32.gmra.mxu3 %vm670_vm2, %v913_v25 }
 0x2b6   : > { %1275 = vmatmul.msk.f32.gmra.mxu3 %vm670_vm2, %v914_v28 }
 0x2bd   : > { %v899_v29 = vpop.f32.mrf.mxu3 }
 0x2be   : > { %v900_v30 = vadd.f32 %v1308_v16, %v899_v29 }
 0x2c0   : > { %v915_v31 = vmax.f32 %v900_v30, 0.0 }
 0x2c2   : > { %1276 = vmatmul.msk.f32.gmra.mxu3 %vm670_vm2, %v915_v31 }
 0x2c5   : > { %v902_v32 = vpop.f32.mrf.mxu3 }
 0x2c6   : > { %v903_v33 = vadd.f32 %v1308_v16, %v902_v32  ;;  %v1079_v32 = vpop.permute.xlu1 %1078 }
 0x2c8   : > { %v916_v34 = vmax.f32 %v903_v33, 0.0 }
 0x2ca   : > { %1277 = vmatmul.msk.f32.gmra.mxu3 %vm670_vm2, %v916_v34 }
 0x2cd   : > { %v905_v35 = vpop.f32.mrf.mxu3 }
 0x2ce   : > { %v906_v36 = vadd.f32 %v1308_v16, %v905_v35  ;;  %v1081_v35 = vpop.permute.xlu2 %1080 }
 0x2d0   : > { %v917_v37 = vmax.f32 %v906_v36, 0.0 }
 0x2d2   : > { %1278 = vmatmul.msk.f32.gmra.mxu3 %vm670_vm2, %v917_v37 }
 0x2f0   : > { %v1087_v38 = vpop.permute.xlu2 %1086 }
 0x319   : > { %v908_v42 = vpop.f32.mrf.mxu3 }
 0x31a   : > { %v909_v43 = vadd.f32 %v1308_v16, %v908_v42 }
 0x31c   : > { %v918_v44 = vmax.f32 %v909_v43, 0.0 }
 0x31e   : > { %1279 = vmatmul.msk.f32.gmra.mxu3 %vm670_vm2, %v918_v44  ;;  %v1083_v44 = vpop.permute.xlu0 %1082 }
 0x321   : > { %v967_v46 = vpop.f32.mrf.mxu3 }
 0x322   : > { %v968_v47 = vadd.f32 %v1309_v45, %v967_v46  ;;  %v1115_v46 = vpop.permute.xlu2 %1114 }
 0x324   : > { %v991_v48 = vmax.f32 %v968_v47, 0.0 }
 0x326   : > { %1280 = vmatmul.msk.f32.vlgmr.msrb.gmra.mxu0 %vm589_vm1, %v991_v48 }
 0x329   : > { %v970_v49 = vpop.f32.mrf.mxu3 }
 0x32a   : > { %v971_v50 = vadd.f32 %v1309_v45, %v970_v49 }
 0x32c   : > { %v992_v51 = vmax.f32 %v971_v50, 0.0 }
 0x32e   : > { %1281 = vmatmul.msk.f32.gmra.mxu0 %vm589_vm1, %v992_v51 }
 0x331   : > { %v973_v52 = vpop.f32.mrf.mxu3 }
 0x332   : > { %v974_v53 = vadd.f32 %v1309_v45, %v973_v52  ;;  %v1085_v52 = vpop.permute.xlu1 %1084 }
 0x334   : > { %v993_v54 = vmax.f32 %v974_v53, 0.0  ;;  %v1117_v53 = vpop.permute.xlu0 %1116 }
 0x336   : > { %1282 = vmatmul.msk.f32.gmra.mxu0 %vm589_vm1, %v993_v54 }
 0x339   : > { %v976_v55 = vpop.f32.mrf.mxu3 }
 0x33a   : > { %v977_v56 = vadd.f32 %v1309_v45, %v976_v55 }
 0x33c   : > { %v994_v57 = vmax.f32 %v977_v56, 0.0 }
 0x33e   : > { %1283 = vmatmul.msk.f32.gmra.mxu0 %vm589_vm1, %v994_v57 }
 0x345   : > { %v979_v58 = vpop.f32.mrf.mxu3 }
 0x346   : > { %v980_v59 = vadd.f32 %v1309_v45, %v979_v58 }
 0x348   : > { %v995_v60 = vmax.f32 %v980_v59, 0.0  ;;  %v1119_v59 = vpop.permute.xlu1 %1118 }
 0x34a   : > { %1284 = vmatmul.msk.f32.gmra.mxu0 %vm589_vm1, %v995_v60 }
 0x34d   : > { %v982_v61 = vpop.f32.mrf.mxu3 }
 0x34e   : > { %v983_v62 = vadd.f32 %v1309_v45, %v982_v61 }
 0x350   : > { %v996_v63 = vmax.f32 %v983_v62, 0.0 }
 0x352   : > { %1285 = vmatmul.msk.f32.gmra.mxu0 %vm589_vm1, %v996_v63 }
 0x355   : > { %v985_v0 = vpop.f32.mrf.mxu3 }
 0x356   : > { %v986_v1 = vadd.f32 %v1309_v45, %v985_v0 }
 0x358   : > { %v997_v2 = vmax.f32 %v986_v1, 0.0 }
 0x35a   : > { %1286 = vmatmul.msk.f32.gmra.mxu0 %vm589_vm1, %v997_v2 }
 0x3a1   : > { %v988_v7 = vpop.f32.mrf.mxu3 }
 0x3a2   : > { %v989_v8 = vadd.f32 %v1309_v45, %v988_v7 }
 0x3a3   : > { %v1048_v9 = vpop.f32.mrf.mxu0 }
 0x3a4   : > { %v998_v10 = vmax.f32 %v989_v8, 0.0  ;;  %v1049_v11 = vadd.f32 %v1625_v5, %v1048_v9 }
 0x3a6   : > { %v1128_v14 = vsel %vm507_vm0, %v1049_v11, %v1073_v13  ;;  %1287 = vmatmul.msk.f32.gmra.mxu0 %vm589_vm1, %v998_v10 }
 0x3a7   : > { %v1136_v15 = vsel %vm670_vm2, %v1128_v14, %v1105_v6 }
 0x3a8   : > { %v1144_v16 = vsel %vm589_vm1, %v1136_v15, %v1105_v6 }
 0x3a9   : > { %1153 = vst.msk [vmem:[%s1632_s18] sm:$0xff] %vm1152_vm4, %v1144_v16 }
 0x3ab   : > { %v1051_v18 = vpop.f32.mrf.mxu0 }
 0x3ac   : > { %v1052_v19 = vadd.f32 %v1625_v5, %v1051_v18 }
 0x3ae   : > { %v1129_v21 = vsel %vm507_vm0, %v1052_v19, %v1075_v20 }
 0x3af   : > { %v1137_v22 = vsel %vm670_vm2, %v1129_v21, %v1107_v3 }
 0x3b0   : > { %v1145_v23 = vsel %vm589_vm1, %v1137_v22, %v1107_v3 }
 0x3b1   : > { %1154 = vst.msk [vmem:[%s1632_s18 + $0x8] sm:$0xff] %vm1152_vm4, %v1145_v23 }
 0x3b3   : > { %v1054_v24 = vpop.f32.mrf.mxu0 }
 0x3b4   : > { %v1055_v25 = vadd.f32 %v1625_v5, %v1054_v24 }
 0x3b6   : > { %v1130_v27 = vsel %vm507_vm0, %v1055_v25, %v1077_v26 }
 0x3b7   : > { %v1138_v28 = vsel %vm670_vm2, %v1130_v27, %v1109_v12 }
 0x3b8   : > { %v1146_v29 = vsel %vm589_vm1, %v1138_v28, %v1109_v12 }
 0x3b9   : > { %1155 = vst.msk [vmem:[%s1632_s18 + $0x10] sm:$0xff] %vm1152_vm4, %v1146_v29 }
 0x3bb   : > { %v1057_v30 = vpop.f32.mrf.mxu0 }
 0x3bc   : > { %v1058_v31 = vadd.f32 %v1625_v5, %v1057_v30 }
 0x3be   : > { %v1131_v33 = vsel %vm507_vm0, %v1058_v31, %v1079_v32 }
 0x3bf   : > { %v1139_v34 = vsel %vm670_vm2, %v1131_v33, %v1111_v17 }
 0x3c0   : > { %v1147_v36 = vsel %vm589_vm1, %v1139_v34, %v1111_v17 }
 0x3c1   : > { %1156 = vst.msk [vmem:[%s1632_s18 + $0x18] sm:$0xff] %vm1152_vm4, %v1147_v36 }
 0x3c7   : > { %v1060_v37 = vpop.f32.mrf.mxu0 }
 0x3c8   : > { %v1061_v39 = vadd.f32 %v1625_v5, %v1060_v37 }
 0x3ca   : > { %v1132_v40 = vsel %vm507_vm0, %v1061_v39, %v1081_v35 }
 0x3cb   : > { %v1140_v41 = vsel %vm670_vm2, %v1132_v40, %v1113_v4 }
 0x3cc   : > { %v1148_v42 = vsel %vm589_vm1, %v1140_v41, %v1113_v4 }
 0x3cd   : > { %1157 = vst.msk [vmem:[%s1632_s18 + $0x20] sm:$0xff] %vm1152_vm4, %v1148_v42 }
 0x3cf   : > { %v1063_v43 = vpop.f32.mrf.mxu0 }
 0x3d0   : > { %v1064_v45 = vadd.f32 %v1625_v5, %v1063_v43 }
 0x3d2   : > { %v1133_v47 = vsel %vm507_vm0, %v1064_v45, %v1083_v44 }
 0x3d3   : > { %v1141_v48 = vsel %vm670_vm2, %v1133_v47, %v1115_v46 }
 0x3d4   : > { %v1149_v49 = vsel %vm589_vm1, %v1141_v48, %v1115_v46 }
 0x3d5   : > { %1158 = vst.msk [vmem:[%s1632_s18 + $0x28] sm:$0xff] %vm1152_vm4, %v1149_v49 }
 0x3d7   : > { %v1066_v50 = vpop.f32.mrf.mxu0 }
 0x3d8   : > { %v1067_v51 = vadd.f32 %v1625_v5, %v1066_v50 }
 0x3da   : > { %v1134_v54 = vsel %vm507_vm0, %v1067_v51, %v1085_v52 }
 0x3db   : > { %v1142_v55 = vsel %vm670_vm2, %v1134_v54, %v1117_v53 }
 0x3dc   : > { %v1150_v56 = vsel %vm589_vm1, %v1142_v55, %v1117_v53 }
 0x3dd   : > { %1159 = vst.msk [vmem:[%s1632_s18 + $0x30] sm:$0xff] %vm1152_vm4, %v1150_v56 }
 0x423   : > { %v1069_v57 = vpop.f32.mrf.mxu0 }
 0x424   : > { %v1070_v58 = vadd.f32 %v1625_v5, %v1069_v57 }
 0x426   : > { %v1135_v60 = vsel %vm507_vm0, %v1070_v58, %v1087_v38 }
 0x427   : > { %v1143_v61 = vsel %vm670_vm2, %v1135_v60, %v1119_v59 }
 0x428   : > { %v1151_v62 = vsel %vm589_vm1, %v1143_v61, %v1119_v59 }
 0x429   : > { %1160 = vst.msk [vmem:[%s1632_s18 + $0x38] sm:$0xff] %vm1152_vm4, %v1151_v62 }
 0x42a PF: > { %s24_s29 = sadd.s32 1, %s1333_s29  }
 0x42b   : > { %p21_p4 = scmp.ge.s32.totalorder %s24_s29, 4  }
 0x42d   :  { %23 = sbr.rel (!%p21_p4) target bundleno = 1 (0x1), region = 109 }

</bundles_post_ra>
